<compile_context>
chip_gen: v7x
topology: tpu7x:2x2x1
jax: 0.10.0
libtpu: 0.0.40
codegen_flags: <defaults>
</compile_context>

<pallas_src>
import math
import functools

import jax
import jax.numpy as jnp
from jax.experimental import pallas as pl
from jax.experimental.pallas import tpu as pltpu


# ----------------------------- kernel ------------------------------------- #

def _vlinear_kernel(*refs, use_ln, multi_k, eps, out_cols):
    """Grid = (population, batch, reduction). Refs: x, w, b, [gamma, beta], o, [acc]."""
    if use_ln:
        x_ref, w_ref, b_ref, g_ref, beta_ref, o_ref = refs[:6]
        rest = refs[6:]
    else:
        x_ref, w_ref, b_ref, o_ref = refs[:4]
        g_ref = beta_ref = None
        rest = refs[4:]
    acc_ref = rest[0] if multi_k else None

    def epilogue(y):
        # y: (TP, TB, OUT_p) f32.  Bias / LayerNorm math stays in f32.
        y = y + b_ref[...].astype(jnp.float32)
        if use_ln:
            # Padded columns (>= out_cols) are excluded from the statistics.
            col = jax.lax.broadcasted_iota(jnp.int32, y.shape, y.ndim - 1)
            mask = col < out_cols
            inv_n = 1.0 / float(out_cols)
            mean = jnp.sum(jnp.where(mask, y, 0.0), axis=-1, keepdims=True) * inv_n
            centered = jnp.where(mask, y - mean, 0.0)
            var = jnp.sum(centered * centered, axis=-1, keepdims=True) * inv_n
            y = centered * jax.lax.rsqrt(var + eps)
            y = y * g_ref[...].astype(jnp.float32) + beta_ref[...].astype(jnp.float32)
        o_ref[...] = y.astype(o_ref.dtype)

    part = jnp.einsum("pbi,pio->pbo", x_ref[...], w_ref[...],
                      preferred_element_type=jnp.float32)

    if multi_k:
        k = pl.program_id(2)

        @pl.when(k == 0)
        def _():
            acc_ref[...] = jnp.zeros_like(acc_ref)

        acc_ref[...] += part

        @pl.when(k == pl.num_programs(2) - 1)
        def _():
            epilogue(acc_ref[...])
    else:
        epilogue(part)


# ------------------------- tiling / VMEM budgeting -------------------------- #

def _round_up(n, m):
    return ((n + m - 1) // m) * m


def _vmem_capacity_bytes():
    """Per-TC VMEM capacity (128 MiB on v5e/v6e, 64 MiB on v7x)."""
    try:
        return int(pltpu.get_tpu_info().vmem_capacity_bytes)
    except Exception:
        try:
            kind = jax.devices()[0].device_kind.lower()
            if ("v5" in kind) or ("v6" in kind):
                return 128 * 1024 * 1024
        except Exception:
            pass
        return 64 * 1024 * 1024  # conservative fallback (v7x per-TC)


def _working_set_bytes(tp, tb, tk, out_p, in_isz, out_isz, use_ln):
    """Real per-step VMEM footprint (double-buffered pipeline + scratch + temps)."""
    s = 2 * tp * tb * tk * in_isz            # x block
    s += 2 * tp * tk * out_p * in_isz        # weight block
    s += 2 * tp * 1 * out_p * 4              # bias block (f32)
    s += 2 * tp * tb * out_p * out_isz       # output block (output dtype!)
    s += tp * tb * out_p * 4                 # f32 accumulator scratch
    s += 2 * tp * tb * out_p * 4             # in-kernel f32 temporaries (einsum/LN)
    if use_ln:
        s += 2 * 2 * out_p * 4               # gamma / beta blocks
    return s


def _choose_tiling(P, B, in_p, out_p, in_isz, out_isz, use_ln, budget):
    """Pick (TP, TB, TK): members / batch rows / reduction length per grid step."""
    def ws(tp, tb, tk):
        return _working_set_bytes(tp, tb, tk, out_p, in_isz, out_isz, use_ln)

    # Population tiling: keep at least min(P, 8) grid steps so the pipeline
    # (and v7x's two TensorCores) always have work to overlap.
    min_steps = min(P, 8)
    tp_cands = [d for d in range(1, P + 1) if P % d == 0 and P // d >= min_steps]
    tp = 1
    for cand in sorted(tp_cands, reverse=True):
        if ws(cand, B, in_p) <= budget:
            tp = cand
            break

    tb, tk = B, in_p

    # Fallback 1: tile the reduction (IN) axis when even one member is too big.
    if ws(tp, tb, tk) > budget:
        tp = 1
        k_cands = [k for k in range(128, in_p + 1, 128) if in_p % k == 0]
        tk = k_cands[0] if k_cands else in_p
        for cand in sorted(k_cands, reverse=True):
            if ws(tp, tb, cand) <= budget:
                tk = cand
                break

    # Fallback 2: tile the batch axis if the weight+output slab is still too big.
    if ws(tp, tb, tk) > budget:
        b_cands = [d for d in range(8, B + 1, 8) if B % d == 0]
        if b_cands:
            tb = b_cands[0]  # best effort (smallest)
            for cand in sorted(b_cands, reverse=True):
                if ws(tp, cand, tk) <= budget:
                    tb = cand
                    break
        # TODO(synk): tile OUT as a last resort for extremely large out_features.

    # Pipeline depth: tiny populations -> split the batch for more grid steps.
    # Weight index_map is constant along the batch axis, so no weight re-reads.
    steps = (P // tp) * (B // tb) * (in_p // tk)
    if steps < 8 and (in_p // tk) == 1 and B >= 16:
        for cand in sorted([d for d in range(8, B, 8) if B % d == 0], reverse=True):
            if (P // tp) * (B // cand) >= 8:
                tb = cand
                break

    return tp, tb, tk


# ----------------------------- wrapper ------------------------------------ #

def vectorized_linear(x, weight, bias, ln_weight=None, ln_bias=None,
                      ln_eps=1e-5, compute_dtype=None):
    """Forward pass of VectorizedLinearLayer.

    x:       (P, B, IN)
    weight:  (P, IN, OUT)
    bias:    (P, 1, OUT)
    ln_weight / ln_bias: (OUT,) if layer norm is used, else None.
    compute_dtype: optional dtype (e.g. jnp.bfloat16) for the x / weight HBM
        stream; accumulation, bias and LayerNorm stay f32 and the output keeps
        x's original dtype.

    Note: IN/OUT are zero-padded to multiples of 128 here (lane-dense tiles and
    unmasked stores).  For production use, pad parameters once at init time
    instead of per call; the padding here is layout plumbing, not compute.
    """
    P, B, IN = x.shape
    OUT = weight.shape[-1]
    assert weight.shape == (P, IN, OUT)
    assert bias.shape == (P, 1, OUT)

    out_dtype = x.dtype
    if compute_dtype is not None:
        x = x.astype(compute_dtype)
        weight = weight.astype(compute_dtype)
    in_itemsize = jnp.dtype(x.dtype).itemsize
    out_itemsize = jnp.dtype(out_dtype).itemsize
    bias = bias.astype(jnp.float32)          # bias math stays f32 (v5e-safe)
    use_ln = ln_weight is not None

    # --- pad feature dims to multiples of 128 (lane-dense, unmasked vst) ---
    IN_p = _round_up(IN, 128)
    OUT_p = _round_up(OUT, 128)
    if IN_p != IN:
        x = jnp.pad(x, ((0, 0), (0, 0), (0, IN_p - IN)))
        weight = jnp.pad(weight, ((0, 0), (0, IN_p - IN), (0, 0)))
    if OUT_p != OUT:
        weight = jnp.pad(weight, ((0, 0), (0, 0), (0, OUT_p - OUT)))
        bias = jnp.pad(bias, ((0, 0), (0, 0), (0, OUT_p - OUT)))

    gamma = beta = None
    if use_ln:
        gamma = jnp.pad(ln_weight.astype(jnp.float32).reshape(1, OUT),
                        ((0, 0), (0, OUT_p - OUT)))
        beta = jnp.pad(ln_bias.astype(jnp.float32).reshape(1, OUT),
                       ((0, 0), (0, OUT_p - OUT)))

    # --- tile sizing: 8-32 MiB double-buffered working set, >= 8 grid steps ---
    vmem_cap = _vmem_capacity_bytes()
    budget = max(8 << 20, min(32 << 20, vmem_cap // 4))
    TP, TB, TK = _choose_tiling(P, B, IN_p, OUT_p, in_itemsize, out_itemsize,
                                use_ln, budget)
    p_steps, b_steps, k_steps = P // TP, B // TB, IN_p // TK
    multi_k = k_steps > 1

    ws_bytes = _working_set_bytes(TP, TB, TK, OUT_p, in_itemsize, out_itemsize, use_ln)
    # Keep several MiB of headroom below physical VMEM for Mosaic scratch.
    vmem_limit = int(min(vmem_cap - (8 << 20),
                         max(32 << 20, ws_bytes + (16 << 20))))

    # --- BlockSpecs: grid = (population, batch, reduction) ---
    x_spec = pl.BlockSpec((TP, TB, TK), lambda p, b, k: (p, b, k))
    w_spec = pl.BlockSpec((TP, TK, OUT_p), lambda p, b, k: (p, k, 0))
    b_spec = pl.BlockSpec((TP, 1, OUT_p), lambda p, b, k: (p, 0, 0))
    o_spec = pl.BlockSpec((TP, TB, OUT_p), lambda p, b, k: (p, b, 0))

    kernel = functools.partial(
        _vlinear_kernel,
        use_ln=use_ln,
        multi_k=multi_k,
        eps=float(ln_eps),
        out_cols=int(OUT),
    )

    if use_ln:
        g_spec = pl.BlockSpec((1, OUT_p), lambda p, b, k: (0, 0))
        beta_spec = pl.BlockSpec((1, OUT_p), lambda p, b, k: (0, 0))
        in_specs = [x_spec, w_spec, b_spec, g_spec, beta_spec]
        args = (x, weight, bias, gamma, beta)
    else:
        in_specs = [x_spec, w_spec, b_spec]
        args = (x, weight, bias)

    scratch = [pltpu.VMEM((TP, TB, OUT_p), jnp.float32)] if multi_k else []

    bytes_accessed = (in_itemsize * (P * B * IN_p + P * IN_p * OUT_p)
                      + 4 * P * OUT_p
                      + out_itemsize * P * B * OUT_p
                      + (2 * OUT_p * 4 if use_ln else 0))
    cost = pl.CostEstimate(
        flops=2 * P * B * IN_p * OUT_p,
        transcendentals=(P * B if use_ln else 0),
        bytes_accessed=bytes_accessed,
    )

    out = pl.pallas_call(
        kernel,
        out_shape=jax.ShapeDtypeStruct((P, B, OUT_p), out_dtype),
        grid_spec=pltpu.PrefetchScalarGridSpec(
            num_scalar_prefetch=0,
            grid=(p_steps, b_steps, k_steps),
            in_specs=in_specs,
            out_specs=o_spec,
            scratch_shapes=scratch,
        ),
        compiler_params=pltpu.CompilerParams(
            dimension_semantics=("parallel", "parallel", "arbitrary"),
            vmem_limit_bytes=vmem_limit,
        ),
        cost_estimate=cost,
    )(*args)

    if OUT_p != OUT:
        out = out[..., :OUT]
    return out


# ----------------------- deterministic param init ------------------------- #

def init_params(key, population_size, in_features, out_features):
    """Mirrors the PyTorch init shapes/bounds; values are deterministic (PRNGKey)."""
    kw, kb = jax.random.split(key)
    # kaiming_uniform_(a=sqrt(5)) on an (in, out) 2-D tensor: torch's fan_in for
    # 2-D is size(1) = out_features, bound = 1/sqrt(fan_in).
    w_bound = 1.0 / math.sqrt(out_features)
    weight = jax.random.uniform(
        kw, (population_size, in_features, out_features),
        minval=-w_bound, maxval=w_bound, dtype=jnp.float32)
    b_bound = 1.0 / math.sqrt(out_features) if out_features > 0 else 0.0
    bias = jax.random.uniform(
        kb, (population_size, 1, out_features),
        minval=-b_bound, maxval=b_bound, dtype=jnp.float32)
    return weight, bias


# --------------------------------- main ------------------------------------ #

if __name__ == "__main__":
    P, B, IN, OUT = 4, 8, 32, 64

    key = jax.random.PRNGKey(0)
    kx, kp = jax.random.split(key)
    x = jax.random.normal(kx, (P, B, IN), dtype=jnp.float32)
    weight, bias = init_params(kp, P, IN, OUT)

    ref = jnp.einsum("pbi,pio->pbo", x, weight) + bias

    # --- path 1: use_layer_norm=False (default), f32 compute ---
    out = vectorized_linear(x, weight, bias)
    out = jax.block_until_ready(out)
    assert out.shape == (P, B, OUT)
    assert jnp.allclose(out, ref, atol=1e-5, rtol=1e-5), "matmul+bias mismatch"

    # --- path 2: use_layer_norm=True ---
    # Faithful to the PyTorch code: torch.nn.LayerNorm(out_features, population_size)
    # passes population_size as the `eps` argument.
    # TODO(synk): ln_eps = population_size reproduces that PyTorch bug verbatim.
    ln_weight = jnp.ones((OUT,), dtype=jnp.float32)   # LayerNorm gamma init
    ln_bias = jnp.zeros((OUT,), dtype=jnp.float32)    # LayerNorm beta init
    ln_eps = float(P)
    out_ln = vectorized_linear(x, weight, bias, ln_weight, ln_bias, ln_eps)
    out_ln = jax.block_until_ready(out_ln)
    mu = jnp.mean(ref, axis=-1, keepdims=True)
    var = jnp.mean((ref - mu) ** 2, axis=-1, keepdims=True)
    ref_ln = (ref - mu) * jax.lax.rsqrt(var + ln_eps) * ln_weight + ln_bias
    assert jnp.allclose(out_ln, ref_ln, atol=1e-5, rtol=1e-5), "layernorm mismatch"

    # --- path 3: bf16 weight/activation streaming (halves HBM bytes) ---
    out_bf16 = vectorized_linear(x, weight, bias, compute_dtype=jnp.bfloat16)
    out_bf16 = jax.block_until_ready(out_bf16)
    assert jnp.max(jnp.abs(out_bf16 - ref)) < 0.1, "bf16 path sanity check failed"

    # --- path 4: already lane-aligned shapes (no padding), larger population ---
    P2, B2, IN2, OUT2 = 8, 16, 128, 128
    k2x, k2p = jax.random.split(jax.random.PRNGKey(1))
    x2 = jax.random.normal(k2x, (P2, B2, IN2), dtype=jnp.float32)
    w2, b2 = init_params(k2p, P2, IN2, OUT2)
    g2 = jnp.ones((OUT2,), dtype=jnp.float32)
    bt2 = jnp.zeros((OUT2,), dtype=jnp.float32)
    ref2 = jnp.einsum("pbi,pio->pbo", x2, w2) + b2
    mu2 = jnp.mean(ref2, axis=-1, keepdims=True)
    var2 = jnp.mean((ref2 - mu2) ** 2, axis=-1, keepdims=True)
    ref2_ln = (ref2 - mu2) * jax.lax.rsqrt(var2 + 1e-5) * g2 + bt2
    out2 = vectorized_linear(x2, w2, b2, g2, bt2, 1e-5)
    out2 = jax.block_until_ready(out2)
    assert jnp.allclose(out2, ref2_ln, atol=1e-4, rtol=1e-4), "aligned LN mismatch"

    print("KERNEL_OK")
</pallas_src>

<mosaic_0001>
module attributes {stable_mosaic.version = 11 : i64} {
  func.func @_vlinear_kernel(%arg0: i32, %arg1: i32, %arg2: i32, %arg3: memref<1x8x128xf32, #tpu.memory_space<vmem>>, %arg4: memref<1x128x128xf32, #tpu.memory_space<vmem>>, %arg5: memref<1x1x128xf32, #tpu.memory_space<vmem>>, %arg6: memref<1x8x128xf32, #tpu.memory_space<vmem>>) attributes {dimension_semantics = [#tpu.dimension_semantics<parallel>, #tpu.dimension_semantics<parallel>, #tpu.dimension_semantics<arbitrary>], iteration_bounds = array<i64: 4, 1, 1>, scalar_prefetch = 0 : i64, scratch_operands = 0 : i64, tpu.core_type = #tpu.core_type<tc>, window_params = [{transform_indices = @transform_0, window_bounds = array<i64: 1, 8, 128>}, {transform_indices = @transform_1, window_bounds = array<i64: 1, 128, 128>}, {transform_indices = @transform_2, window_bounds = array<i64: 1, 1, 128>}, {transform_indices = @transform_3, window_bounds = array<i64: 1, 8, 128>}]} {
    %c0 = arith.constant 0 : index
    %c0_0 = arith.constant 0 : index
    %c0_1 = arith.constant 0 : index
    %0 = vector.load %arg3[%c0, %c0_0, %c0_1] : memref<1x8x128xf32, #tpu.memory_space<vmem>>, vector<1x8x128xf32>
    %c0_2 = arith.constant 0 : index
    %c0_3 = arith.constant 0 : index
    %c0_4 = arith.constant 0 : index
    %1 = vector.load %arg4[%c0_2, %c0_3, %c0_4] : memref<1x128x128xf32, #tpu.memory_space<vmem>>, vector<1x128x128xf32>
    "tpu.trace_start"() <{level = 10 : i32, message = "pbi,pio->pbo"}> : () -> ()
    %cst = arith.constant dense<0.000000e+00> : vector<1x8x128xf32>
    %2 = tpu.matmul %0, %1, %cst {dimension_numbers = #tpu.dot_dimension_numbers<[2], [1], [1], [2], [0, 0, 0, 1, 1, 2], [0], [0]>} : vector<1x8x128xf32>, vector<1x128x128xf32>, vector<1x8x128xf32> -> vector<1x8x128xf32>
    "tpu.trace_stop"() : () -> ()
    %c0_5 = arith.constant 0 : index
    %c0_6 = arith.constant 0 : index
    %c0_7 = arith.constant 0 : index
    %3 = vector.load %arg5[%c0_5, %c0_6, %c0_7] : memref<1x1x128xf32, #tpu.memory_space<vmem>>, vector<1x1x128xf32>
    %4 = vector.broadcast %3 : vector<1x1x128xf32> to vector<1x8x128xf32>
    %5 = arith.addf %2, %4 : vector<1x8x128xf32>
    %c0_8 = arith.constant 0 : index
    %c0_9 = arith.constant 0 : index
    %c0_10 = arith.constant 0 : index
    %6 = vector.load %arg6[%c0_8, %c0_9, %c0_10] : memref<1x8x128xf32, #tpu.memory_space<vmem>>, vector<1x8x128xf32>
    tpu.vector_store %arg6[%c0_8, %c0_9, %c0_10], %5 {strides = array<i32>} : memref<1x8x128xf32, #tpu.memory_space<vmem>>, vector<1x8x128xf32>,
    return
  }
  func.func @transform_0(%arg0: i32, %arg1: i32, %arg2: i32) -> (i32, i32, i32) {
    %c0_i32 = arith.constant 0 : i32
    return %arg0, %arg1, %arg2 : i32, i32, i32
  }
  func.func @transform_1(%arg0: i32, %arg1: i32, %arg2: i32) -> (i32, i32, i32) {
    %c0_i32 = arith.constant 0 : i32
    %c0_i32_0 = arith.constant 0 : i32
    return %arg0, %arg2, %c0_i32 : i32, i32, i32
  }
  func.func @transform_2(%arg0: i32, %arg1: i32, %arg2: i32) -> (i32, i32, i32) {
    %c0_i32 = arith.constant 0 : i32
    %c0_i32_0 = arith.constant 0 : i32
    %c0_i32_1 = arith.constant 0 : i32
    return %arg0, %c0_i32, %c0_i32_0 : i32, i32, i32
  }
  func.func @transform_3(%arg0: i32, %arg1: i32, %arg2: i32) -> (i32, i32, i32) {
    %c0_i32 = arith.constant 0 : i32
    %c0_i32_0 = arith.constant 0 : i32
    return %arg0, %arg1, %c0_i32 : i32, i32, i32
  }
}

</mosaic_0001>

<bundles_post_ra>
// kernel: tpu_custom_call.1
= control target key start
LH: loop header
LB: loop body
LE: loop exit
PB: predicated region body
PF: predicated region fallthrough
CT: control target
= control target key end

     0   :  { %8 = vsyncpa [#allocation3], 0  ;;  %s1092_s0 = inlined_call_operand.hbm [shape: f32[4,8,128], index: 0, kind: input, shape index: {}]   ;;  %s1093_s1 = inlined_call_operand.hbm [shape: f32[4,128,128], index: 1, kind: input, shape index: {}]   ;;  %s1094_s2 = inlined_call_operand.vmem [shape: f32[4,1,128], index: 2, kind: input, shape index: {}]   ;;  %s1095_s3 = inlined_call_operand.hbm [shape: f32[4,8,128], index: 3, kind: output, shape index: {}]  }
   0x1   :  { %10 = vsyncpa [#allocation3 + $0x1], 0 }
   0x2   :  { %11 = vsyncpa [#allocation6], 0 }
   0x3   :  { %13 = vsyncpa [#allocation6 + $0x1], 0 }
   0x4   :  { %14 = vsyncpa [#allocation4], 0 }
   0x5   :  { %16 = vsyncpa [#allocation4 + $0x1], 0  ;;  %s841_s12 = smov 0   ;;  %s843_s13 = smov 0  }
   0x6   :  { %s845_s14 = smov 0   ;;  %s847_s15 = smov 0  }
   0x7   :  { %s849_s16 = smov 0   ;;  %s851_s17 = smov 0  }
   0x8 LB: > { %s498_s18 = sadd.s32 4294967295, %s811_s17   ;;  %s499_s19 = sadd.s32 4294967294, %s811_s17   ;;  %s811_s17 = sphi %s851_s17, %s22_s17   ;;  %s807_s16 = sphi %s849_s16, %s1113_s16   ;;  %s803_s15 = sphi %s847_s15, %s1112_s15   ;;  %s799_s14 = sphi %s845_s14, %s1111_s14   ;;  %s795_s13 = sphi %s843_s13, %s1110_s13   ;;  %s791_s12 = sphi %s841_s12, %s1109_s12  }
   0x9   : > { %s41_s20 = sadd.s32 1, %s807_s16  ;;  %s52_s21 = sadd.s32 1, %s799_s14 }
   0xa   : > { %p43_p0 = scmp.ge.s32.totalorder %s41_s20, 4  ;;  %p59_p1 = scmp.ne.s32.totalorder %s799_s14, %s795_s13 }
   0xb   : > { %p60_p2 = scmp.eq.s32.totalorder %s811_s17, 0  ;;  %p65_p3 = scmp.ne.s32.totalorder %s795_s13, %s791_s12 }
   0xc   : > { %s1115_s20 = smov (%p43_p0, %s41_s20), 0  ;;  %p66_p5 = scmp.eq.s32.totalorder %s498_s18, 0 }
   0xd   : > { %p882_p4 = por %p60_p2, %p59_p1  ;;  %s45_s23 = ssub.s32 %s807_s16, %s1115_s20 }
   0xe   : > { %p145_p6 = scmp.eq.s32.totalorder %s498_s18, 3  ;;  %p50_p7 = scmp.eq.s32.totalorder %s45_s23, 0 }
   0xf   : > { %p888_p8 = por %p66_p5, %p65_p3  ;;  %p151_p10 = scmp.eq.s32.totalorder %s499_s19, 3 }
  0x10   : > { %p892_p9 = por %p145_p6, %p59_p1  ;;  %p610_p12 = scmp.lt.s32.totalorder %s811_s17, 4 }
  0x11   : > { %s1099_s24 = scalar_select %p888_p8, 1, 0 }
  0x12   : > { %s1100_s25 = scalar_select %p892_p9, 1, 0 }
  0x13   : > { %s897_s26 = scalar_select %p50_p7, %s799_s14, %s52_s21  }
  0x14   : > { %p899_p11 = por %p151_p10, %p65_p3  ;;  %s905_s28 = sand.u32 1, %s799_s14  }
  0x15   : > { %s502_s29 = sshll.u32 %s905_s28, 3  ;;  %s503_s30 = sshll.u32 %s807_s16, 7 }
  0x16   : > { %s1101_s27 = scalar_select %p899_p11, 1, 0 }
  0x17   : > { %s912_s6 = scalar_lea.hbm %s1092_s0, %s503_s30  ;;  %s175_s7 = scalar_lea.vmem [#allocation2], %s502_s29 }
  0x18   : > { %s184_s8 = sshll.u32 %s175_s7, 4  ;;  %p918_p13 = pnand %p610_p12, %p882_p4  ;;  %s914_s8 = int_to_ptr.vmem [resolvable:$true] %s184_s8 }
  0x19   : > { %s172_s10 = scalar_lea.sflag [#allocation3], %s905_s28  ;;  %s665_s11 = scalar_lea.hbm %s912_s6, 128 }
  0x1a   : > { %p666_p2 = scmp.ne.s32.totalorder %s912_s6, %s665_s11  ;;  %p667_p3 = pneg %p918_p13 }
  0x1b   : > { %s670_s21 = scalar_lea.hbm %s1092_s0, 512  ;;  %p671_p4 = scmp.lt.u32.totalorder %s912_s6, %s1092_s0 }
  0x1c   : > { %p668_p5 = pnand %p667_p3, %p666_p2  ;;  %p672_p7 = scmp.lt.u32.totalorder %s670_s21, %s665_s11 }
  0x1d   : > { %p674_p12 = scmp.lt.u32.totalorder %s665_s11, %s912_s6 }
  0x1e   : > { %p669_p6 = pneg %p668_p5  ;;  %p673_p10 = por %p672_p7, %p671_p4 }
  0x20   : > { %p675_p0 = por %p674_p12, %p673_p10 }
  0x22   : > { %p676_p1 = pnand %p675_p0, %p669_p6 }
  0x24   : > { %679 = shalt.err (!%p676_p1)
}
  0x25   : > { %s680_s29 = scalar_lea.vmem %s914_s8, 128  ;;  %s813_s30 = smov [#allocation2]  }
  0x26   : > { %p681_p2 = scmp.ne.s32.totalorder %s914_s8, %s680_s29  ;;  %s685_s4 = sshll.u32 %s813_s30, 4  ;;  %s686_s4 = int_to_ptr.vmem [resolvable:$false] %s685_s4 }
  0x27   : > { %s687_s5 = scalar_lea.vmem %s686_s4, 256  ;;  %p688_p9 = scmp.lt.s32.totalorder %s914_s8, %s686_s4 }
  0x28   : > { %p683_p5 = pnand %p681_p2, %p667_p3  ;;  %p689_p4 = scmp.lt.s32.totalorder %s687_s5, %s680_s29 }
  0x2a   : > { %p684_p11 = pneg %p683_p5  ;;  %p690_p7 = por %p689_p4, %p688_p9 }
  0x2c   : > { %p691_p10 = pnand %p690_p7, %p684_p11 }
  0x2e   : > { %694 = shalt.err (!%p691_p10)
}
  0x2f   : > { %602 = dma.hbm_to_vmem [thread:$0]  (!%p918_p13), %s912_s6, 128, %s914_s8, %s172_s10  }
  0x30   : > { %p1103_p0 = scmp.lt.s32.totalorder %s811_s17, 5  ;;  %p1104_p1 = scmp.ge.s32.totalorder %s811_s17, 1 }
  0x31   : > { %s504_s11 = sshll.u32 %s905_s28, 7  ;;  %s516_s18 = sshll.u32 %s807_s16, 11 }
  0x32   : > { %p954_p6 = pnand %p1104_p1, %p1103_p0  ;;  %s963_s22 = scalar_lea.hbm %s1093_s1, %s516_s18 }
  0x33   : > { %s195_s23 = scalar_lea.vmem [#allocation5], %s504_s11  ;;  %s192_s6 = scalar_lea.sflag [#allocation6], %s905_s28 }
  0x34   : > { %s204_s29 = sshll.u32 %s195_s23, 4  ;;  %s695_s8 = scalar_lea.hbm %s963_s22, 2048  ;;  %s965_s29 = int_to_ptr.vmem [resolvable:$true] %s204_s29 }
  0x35   : > { %p696_p9 = scmp.ne.s32.totalorder %s963_s22, %s695_s8  ;;  %s700_s4 = scalar_lea.hbm %s1093_s1, 8192 }
  0x36   : > { %p701_p2 = scmp.lt.u32.totalorder %s963_s22, %s1093_s1  ;;  %p702_p5 = scmp.lt.u32.totalorder %s700_s4, %s695_s8 }
  0x37   : > { %p698_p11 = pnand %p696_p9, %p667_p3  ;;  %p704_p7 = scmp.lt.u32.totalorder %s695_s8, %s963_s22 }
  0x38   : > { %p703_p4 = por %p702_p5, %p701_p2 }
  0x39   : > { %p699_p12 = pneg %p698_p11 }
  0x3a   : > { %p705_p10 = por %p704_p7, %p703_p4 }
  0x3c   : > { %p706_p0 = pnand %p705_p10, %p699_p12 }
  0x3e   : > { %709 = shalt.err (!%p706_p0)
}
  0x3f   : > { %s710_s11 = scalar_lea.vmem %s965_s29, 2048  ;;  %s814_s19 = smov [#allocation5]  }
  0x40   : > { %p711_p1 = scmp.ne.s32.totalorder %s965_s29, %s710_s11  ;;  %s715_s21 = sshll.u32 %s814_s19, 4  ;;  %s716_s21 = int_to_ptr.vmem [resolvable:$false] %s715_s21 }
  0x41   : > { %s717_s23 = scalar_lea.vmem %s716_s21, 4096  ;;  %p718_p8 = scmp.lt.s32.totalorder %s965_s29, %s716_s21 }
  0x42   : > { %p713_p9 = pnand %p711_p1, %p667_p3  ;;  %p719_p2 = scmp.lt.s32.totalorder %s717_s23, %s710_s11 }
  0x44   : > { %p714_p11 = pneg %p713_p9  ;;  %p720_p5 = por %p719_p2, %p718_p8 }
  0x46   : > { %p721_p4 = pnand %p720_p5, %p714_p11 }
  0x48   : > { %724 = shalt.err (!%p721_p4)
}
  0x49   : > { %s815_s8 = smov 128   ;;  %s816_s10 = smov 8  }
  0x4a   : > { %605 = dma.hbm_to_vmem [thread:$0]  (!%p918_p13), %s963_s22, 2048, %s965_s29, %s192_s6, %s815_s8, %s815_s8, %s816_s10  }
  0x4b   : > { %222 = sbr.rel (%p954_p6) target bundleno = 348 (0x15c), region = 32  ;;  %s996_s30 = sand.u32 (!%p954_p6), 1, %s795_s13  }
  0x4c   : > { %s508_s4 = sshll.u32 (!%p954_p6), %s996_s30, 3  ;;  %s225_s5 = scalar_lea.sflag (!%p954_p6), [#allocation3], %s996_s30 }
  0x4d   : > { %s1002_s18 = scalar_lea.vmem (!%p954_p6), [#allocation2], %s508_s4  ;;  %p1106_p8 = scmp.ne.s32.totalorder (!%p954_p6), %s1099_s24, 0 }
  0x52   : > { %778 = dma.done.wait (%p1106_p8), %s225_s5, 128  }
  0x53   : > { %780 = vsyncadd (%p1106_p8), %s225_s5, 4294967168  ;;  %s509_s28 = sshll.u32 %s996_s30, 7  ;;  %s234_s9 = scalar_lea.sflag [#allocation6], %s996_s30 }
  0x54   : > { %s1010_s7 = scalar_lea.vmem [#allocation5], %s509_s28 }
  0x55   : > { %782 = dma.done.wait (%p1106_p8), %s234_s9, 2048  }
  0x56   : > { %784 = vsyncadd (%p1106_p8), %s234_s9, 4294965248  ;;  %v817_v0 = vmov 0.0|0.0   ;;  %vm818_vm0 = vmmov 0   ;;  %v819_v1 = vmov 0.0   ;;  %v273_v2 = vld [vmem:[%s1010_s7] sm:$0xff]  ;;  %v274_v3 = vld [vmem:[%s1010_s7 + $0x8] sm:$0xff] }
  0x57   : > { %569 = vmatprep.subr.bf16.mxu0 %v817_v0  ;;  %566 = vmatprep.mubr.msk.f32.mxu0 %vm818_vm0, %v819_v1  ;;  %v275_v4 = vld [vmem:[%s1010_s7 + $0x10] sm:$0xff]  ;;  %v570_v5 = vpack.c.bf16 %v274_v3, %v273_v2  ;;  %v276_v6 = vld [vmem:[%s1010_s7 + $0x18] sm:$0xff]  ;;  %v277_v8 = vld [vmem:[%s1010_s7 + $0x20] sm:$0xff]  ;;  %p269_p13 = scmp.lt.s32.totalorder %s803_s15, 3  ;;  %s513_s11 = sshll.u32 %s803_s15, 7 }
  0x58   : > { %v573_v7 = vpack.c.bf16 %v276_v6, %v275_v4  ;;  %v278_v9 = vld [vmem:[%s1010_s7 + $0x28] sm:$0xff]  ;;  %v279_v11 = vld [vmem:[%s1010_s7 + $0x30] sm:$0xff]  ;;  %v280_v12 = vld [vmem:[%s1010_s7 + $0x38] sm:$0xff]  ;;  %s267_s19 = scalar_lea.vmem [#allocation7], %s508_s4  ;;  %s1044_s10 = scalar_lea.hbm %s1095_s3, %s513_s11 }
  0x59   : > { %571 = vmatpush3.bf16.msra.mxu0 %v570_v5  ;;  %v576_v10 = vpack.c.bf16 %v278_v9, %v277_v8  ;;  %v579_v13 = vpack.c.bf16 %v280_v12, %v279_v11  ;;  %v281_v14 = vld [vmem:[%s1010_s7 + $0x40] sm:$0xff]  ;;  %v282_v15 = vld [vmem:[%s1010_s7 + $0x48] sm:$0xff]  ;;  %v283_v17 = vld [vmem:[%s1010_s7 + $0x50] sm:$0xff]  ;;  %s270_s24 = scalar_select %p269_p13, %s803_s15, 3 }
  0x5a   : > { %572 = vmatprep.subr.bf16.mxu0 %v817_v0  ;;  %v582_v16 = vpack.c.bf16 %v282_v15, %v281_v14  ;;  %v284_v18 = vld [vmem:[%s1010_s7 + $0x58] sm:$0xff]  ;;  %v285_v20 = vld [vmem:[%s1010_s7 + $0x60] sm:$0xff]  ;;  %v286_v21 = vld [vmem:[%s1010_s7 + $0x68] sm:$0xff]  ;;  %s382_s21 = sshll.u32 %s267_s19, 4  ;;  %s368_s5 = scalar_lea.sflag [#allocation4], %s996_s30  ;;  %s1046_s21 = int_to_ptr.vmem [resolvable:$true] %s382_s21 }
  0x5b   : > { %v585_v19 = vpack.c.bf16 %v284_v18, %v283_v17  ;;  %v588_v22 = vpack.c.bf16 %v286_v21, %v285_v20  ;;  %v287_v23 = vld [vmem:[%s1010_s7 + $0x70] sm:$0xff]  ;;  %v288_v24 = vld [vmem:[%s1010_s7 + $0x78] sm:$0xff]  ;;  %s271_s6 = scalar_lea.vmem %s1094_s2, %s270_s24  ;;  %p1107_p6 = scmp.ne.s32.totalorder %s1100_s25, 0 }
  0x5c   : > { %v591_v25 = vpack.c.bf16 %v288_v24, %v287_v23  ;;  %v272_v26 = vld [vmem:[%s1002_s18] sm:$0xff]  ;;  %s725_s18 = scalar_lea.vmem %s1046_s21, 128  ;;  %s820_s15 = smov [#allocation7]  }
  0x5d   : > { %574 = vmatpush3.bf16.msra.mxu0 %v573_v7  ;;  %v511_v27 = vld [vmem:[%s271_s6] ss:$0 sm:$0xff]  ;;  %p726_p3 = scmp.ne.s32.totalorder %s1046_s21, %s725_s18  ;;  %s729_s4 = sshll.u32 %s820_s15, 4  ;;  %s730_s4 = int_to_ptr.vmem [resolvable:$false] %s729_s4 }
  0x5e   : > { %575 = vmatprep.subr.bf16.mxu0 %v817_v0  ;;  %s731_s28 = scalar_lea.vmem %s730_s4, 256  ;;  %p732_p10 = scmp.lt.s32.totalorder %s1046_s21, %s730_s4 }
  0x5f   : > { %p727_p12 = pnand %p726_p3, %p1107_p6  ;;  %p733_p0 = scmp.lt.s32.totalorder %s731_s28, %s725_s18 }
  0x61   : > { %577 = vmatpush3.bf16.msra.mxu0 %v576_v10  ;;  %p728_p7 = pneg %p727_p12  ;;  %p734_p1 = por %p733_p0, %p732_p10 }
  0x62   : > { %578 = vmatprep.subr.bf16.mxu0 %v817_v0 }
  0x63   : > { %p735_p9 = pnand %p734_p1, %p728_p7 }
  0x65   : > { %580 = vmatpush3.bf16.msra.mxu0 %v579_v13 }
  0x66   : > { %581 = vmatprep.subr.bf16.mxu0 %v817_v0 }
  0x69   : > { %583 = vmatpush3.bf16.msra.mxu0 %v582_v16 }
  0x6a   : > { %584 = vmatprep.subr.bf16.mxu0 %v817_v0 }
  0x6d   : > { %586 = vmatpush3.bf16.msra.mxu0 %v585_v19 }
  0x6e   : > { %587 = vmatprep.subr.bf16.mxu0 %v817_v0 }
  0x71   : > { %589 = vmatpush3.bf16.msra.mxu0 %v588_v22 }
  0x72   : > { %590 = vmatprep.subr.bf16.mxu0 %v817_v0 }
  0x75   : > { %592 = vmatpush3.bf16.msra.mxu0 %v591_v25 }
  0x78   : > { %567 = vmatmul.mubr.f32.vlgmr.msra.gmra.mrb[0].mxu0 %v272_v26 }
 0x14b   : > { %v362_v28 = vpop.f32.mrb[0].mxu0 }
 0x14c   : > { %v363_v29 = vadd.f32 %v511_v27, %v362_v28  ;;  %v568_v30 = vpop.f32.mrb[1].mxu0 }
 0x14e   : > { %366 = vst [vmem:[%s267_s19] sm:$0xff] %v363_v29 }
 0x14f   : > { %738 = shalt.err (!%p735_p9)
}
 0x150   : > { %s739_s30 = scalar_lea.hbm %s1044_s10, 128  ;;  %s743_s24 = scalar_lea.hbm %s1095_s3, 512 }
 0x151   : > { %p740_p11 = scmp.ne.s32.totalorder %s1044_s10, %s739_s30  ;;  %p744_p4 = scmp.lt.u32.totalorder %s1044_s10, %s1095_s3 }
 0x152   : > { %p745_p8 = scmp.lt.u32.totalorder %s743_s24, %s739_s30  ;;  %p747_p3 = scmp.lt.u32.totalorder %s739_s30, %s1044_s10 }
 0x153   : > { %p741_p2 = pnand %p740_p11, %p1107_p6 }
 0x154   : > { %p746_p13 = por %p745_p8, %p744_p4 }
 0x155   : > { %p742_p5 = pneg %p741_p2 }
 0x156   : > { %p748_p12 = por %p747_p3, %p746_p13 }
 0x158   : > { %p749_p7 = pnand %p748_p12, %p742_p5 }
 0x15a   : > { %752 = shalt.err (!%p749_p7)
}
 0x15b   : > { %597 = dma.vmem_to_hbm [thread:$0]  (%p1107_p6), %s1046_s21, 128, %s1044_s10, %s368_s5  }
 0x15c PF: > { %p611_p10 = scmp.ge.s32.totalorder %s811_s17, 2  ;;  %s394_s6 = sand.u32 1, %s791_s12  }
 0x15d   : > { %p1108_p0 = scmp.ne.s32.totalorder %s1101_s27, 0  ;;  %s395_s11 = scalar_lea.sflag [#allocation4], %s394_s6 }
 0x15f   : > { %p607_p1 = pnand %p611_p10, %p1108_p0 }
 0x161   : > { %786 = dma.done.wait (!%p607_p1), %s395_s11, 128  }
 0x162   : > { %788 = vsyncadd (!%p607_p1), %s395_s11, 4294967168  ;;  %s22_s17 = sadd.s32 1, %s811_s17   ;;  %s1109_s12 = smov %s795_s13 }
 0x163   : > { %p19_p9 = scmp.ge.s32.totalorder %s22_s17, 6   ;;  %s1110_s13 = smov %s799_s14 }
 0x164   : > { %s1111_s14 = smov %s897_s26  ;;  %s1112_s15 = smov %s807_s16 }
 0x165   : > { %s1113_s16 = smov %s1115_s20  ;;  %21 = sbr.rel (!%p19_p9) target bundleno = 8 (0x8), region = 93 }
 0x16c   :  { %400 = vsyncpa [#allocation3], 1 }
 0x16d   :  { %402 = vsyncpa [#allocation3 + $0x1], 1 }
 0x16e   :  { %403 = vsyncpa [#allocation6], 1 }
 0x16f   :  { %405 = vsyncpa [#allocation6 + $0x1], 1 }
 0x170   :  { %406 = vsyncpa [#allocation4], 1 }
 0x171   :  { %408 = vsyncpa [#allocation4 + $0x1], 1 }

</bundles_post_ra>
